<compile_context>
chip_gen: v7x
topology: tpu7x:2x2x1
jax: 0.10.0
libtpu: 0.0.40
codegen_flags: <defaults>
</compile_context>

<pallas_src>
import math

import numpy as np
import jax
import jax.numpy as jnp
from jax.experimental import pallas as pl
from jax.experimental.pallas import tpu as pltpu

EPS = 1e-5  # torch BatchNorm default eps
VMEM = pltpu.MemorySpace.VMEM


# ---------------------------------------------------------------------------
# Fused Pallas kernel (whole forward pass)
# ---------------------------------------------------------------------------
def _make_kernel(n_batch, hidden):
    inv_m1 = 1.0 / (n_batch * 512)   # BN3d(8):  per-channel count = N*8*8*8
    inv_m2 = 1.0 / (n_batch * 8)     # BN3d(16): per-channel count = N*2*2*2
    inv_mb = 1.0 / n_batch           # BN1d:     per-feature count = N
    blk = n_batch * 64               # pool slab width in lanes (128-aligned for even N)

    def kernel(cols1_ref, w2d_ref, wbig_ref, ps_ref, out_ref):
        f32 = jnp.float32

        # ---- unpack the packed small-parameter tile (one DMA) ---------------
        ps = ps_ref[...]                       # (16, 128)
        g2_row, be2_row = ps[0:1, :], ps[1:2, :]
        g3_row, be3_row = ps[2:3, :], ps[3:4, :]
        gfc, befc = ps[4:5, 0:hidden], ps[5:6, 0:hidden]
        fc2_w, fc2_b = ps[6:7, 0:hidden], ps[7:8, 0:1]
        w1t = ps[8:16, 0:32]                   # conv1 weight (8, K=27 padded to 32)
        g1_col, be1_col = ps[8:16, 32:33], ps[8:16, 33:34]

        # ---- unpack the merged weight slab (one DMA) -------------------------
        w3d = wbig_ref[:, 0:128]               # conv3 dense per-sample matrix
        p0 = wbig_ref[:, 128:256]              # per-channel group-sum matrix
        fc1_wt = wbig_ref[:, 256:256 + hidden]  # fc1 weight, transposed

        # ---- conv1 (bias cancels in BN): lane-dense (8,32)@(32, N*512) -------
        # (<2% MXU row/K utilization -- acceptable at toy size, MXU is idle.)
        y1 = jnp.dot(w1t, cols1_ref[...], preferred_element_type=f32)
        # one-pass per-channel (row) batch stats over all N*512 positions
        s1 = jnp.sum(y1, axis=1, keepdims=True) * inv_m1
        s2 = jnp.sum(y1 * y1, axis=1, keepdims=True) * inv_m1
        var1 = s2 - s1 * s1
        scale1 = g1_col * jax.lax.rsqrt(var1 + EPS)    # >= 0 (requires gamma >= 0)
        shift1 = be1_col - s1 * scale1

        # ---- MaxPool3d(2,2): balanced pairwise max tree over lane slabs ------
        # columns of y1 are (dd,hh,ww, n,dp,hp,wp): pool partners are the 8
        # contiguous slabs of width blk = N*64 lanes.
        m01 = jnp.maximum(y1[:, 0 * blk:1 * blk], y1[:, 1 * blk:2 * blk])
        m23 = jnp.maximum(y1[:, 2 * blk:3 * blk], y1[:, 3 * blk:4 * blk])
        m45 = jnp.maximum(y1[:, 4 * blk:5 * blk], y1[:, 5 * blk:6 * blk])
        m67 = jnp.maximum(y1[:, 6 * blk:7 * blk], y1[:, 7 * blk:8 * blk])
        pooled = jnp.maximum(jnp.maximum(m01, m23), jnp.maximum(m45, m67))
        # apply the BN affine AFTER the max (valid: scale1 >= 0), 1 vreg of work
        pooled = pooled * scale1 + shift1               # (8, N*64), cols (n, s)

        # ---- in-register relayout (c,(n,s)) -> (n,(c,s)): slices + concats ---
        # (replaces 16 masked partial stores + scratch round trip)
        rows = []
        for n in range(n_batch):
            pieces = [pooled[c:c + 1, n * 64:(n + 1) * 64] for c in range(8)]
            rows.append(jnp.concatenate(pieces, axis=1))    # (1, 512)
        feat = jnp.concatenate(rows, axis=0)                # (N, 512) torch flatten

        # ---- conv+BN3d(16) as dense per-sample matmul + one stats matmul -----
        def conv_bn(x, wd, g_row, be_row):
            y = jnp.dot(x, wd, preferred_element_type=f32)          # (N, 128)
            mom = jnp.concatenate(
                [jnp.sum(y, axis=0, keepdims=True),
                 jnp.sum(y * y, axis=0, keepdims=True)], axis=0)    # (2, 128)
            momc = jnp.dot(mom, p0, preferred_element_type=f32) * inv_m2
            mean = momc[0:1, :]                                     # per-channel,
            var = momc[1:2, :] - mean * mean                        # broadcast to 128
            return (y - mean) * (g_row * jax.lax.rsqrt(var + EPS)) + be_row

        y2 = conv_bn(feat, w2d_ref[...], g2_row, be2_row)           # (N, 128)
        y3 = conv_bn(y2, w3d, g3_row, be3_row)                      # (N, 128)

        # ---- head: fc1 (bias cancels in BN1d) -> BN1d -> ReLU -> fc2 ---------
        h = jnp.dot(y3, fc1_wt, preferred_element_type=f32)         # (N, H)
        hm = jnp.sum(h, axis=0, keepdims=True) * inv_mb
        hv = jnp.sum(h * h, axis=0, keepdims=True) * inv_mb - hm * hm
        h = (h - hm) * (gfc * jax.lax.rsqrt(hv + EPS)) + befc
        h = jnp.maximum(h, 0.0)
        out_ref[...] = jnp.sum(h * fc2_w, axis=1, keepdims=True) + fc2_b

    return kernel


# ---------------------------------------------------------------------------
# Forward wrapper.
# TODO(synk): the conv1 im2col (pad + transpose of the raw input) stays as a
# single host-side XLA fusion; building cols1 in-kernel from the (N,24^3)
# volume would need lane-scatter relayouts that cost more than the one fusion.
# ---------------------------------------------------------------------------
def total_model_forward(x, p):
    # x: (N, 1, 24, 24, 24) NCDHW (as in PyTorch); N even keeps slabs 128-aligned.
    N = x.shape[0]
    xs = x.reshape(N, 24, 24, 24).astype(jnp.float32)
    xp = jnp.pad(xs, ((0, 0), (1, 1), (1, 1), (1, 1)))[:, :24, :24, :24]
    # conv1 has k == stride == 3, so the padded windows tile the volume exactly:
    # rows = (kd,kh,kw); columns = (dd,hh,ww, n,dp,hp,wp) with do = 2*dp + dd,
    # so the 2x2x2 pool partners are contiguous lane slabs.
    xw = xp.reshape(N, 4, 2, 3, 4, 2, 3, 4, 2, 3)   # (n, dp,dd,kd, hp,hh,kh, wp,ww,kw)
    cols1 = jnp.transpose(xw, (3, 6, 9, 2, 5, 8, 0, 1, 4, 7)).reshape(27, N * 512)
    cols1 = jnp.pad(cols1, ((0, 5), (0, 0)))        # K: 27 -> 32 (aligned rows)

    kernel = _make_kernel(N, hidden=32)
    args = (cols1, p["w2d"], p["wbig"], p["psmall"])   # 4 DMAs total
    return pl.pallas_call(
        kernel,
        out_shape=jax.ShapeDtypeStruct((N, 1), jnp.float32),
        in_specs=[pl.BlockSpec(memory_space=VMEM) for _ in args],
        out_specs=pl.BlockSpec(memory_space=VMEM),
    )(*args)


# ---------------------------------------------------------------------------
# Parameter preprocessing (host-side, once)
# ---------------------------------------------------------------------------
def _dense_conv3d_matrix(w, in_spatial, stride, pad):
    """Per-sample dense matrix M so that flat_out = flat_in @ M (both c-major)."""
    w = np.asarray(w, np.float32)
    cout, cin, k = w.shape[0], w.shape[1], w.shape[2]
    di = in_spatial
    do = (di + 2 * pad - k) // stride + 1
    m = np.zeros((cin * di * di * di, cout * do * do * do), np.float32)
    for co in range(cout):
        for od in range(do):
            for oh in range(do):
                for ow in range(do):
                    ocol = ((co * do + od) * do + oh) * do + ow
                    for ci in range(cin):
                        for kd in range(k):
                            idd = od * stride - pad + kd
                            if idd < 0 or idd >= di:
                                continue
                            for kh in range(k):
                                ih = oh * stride - pad + kh
                                if ih < 0 or ih >= di:
                                    continue
                                for kw in range(k):
                                    iw = ow * stride - pad + kw
                                    if iw < 0 or iw >= di:
                                        continue
                                    irow = ((ci * di + idd) * di + ih) * di + iw
                                    m[irow, ocol] = w[co, ci, kd, kh, kw]
    return m


def init_params(key, d_in=128, hidden=32):
    ks = jax.random.split(key, 6)

    def xavier_normal(k, shape, gain):          # shape = (fan_out, fan_in)
        fan_out, fan_in = shape
        std = gain * math.sqrt(2.0 / (fan_in + fan_out))
        return np.asarray(std * jax.random.normal(k, shape, jnp.float32))

    def conv_weight(k, cout, cin):              # torch Conv3d default init
        bound = 1.0 / math.sqrt(cin * 27)
        return np.asarray(jax.random.uniform(k, (cout, cin, 3, 3, 3),
                                             jnp.float32, -bound, bound))

    w1 = conv_weight(ks[0], 8, 1)
    w2 = conv_weight(ks[1], 16, 8)
    w3 = conv_weight(ks[2], 16, 16)
    fc1_w = xavier_normal(ks[3], (hidden, d_in), math.sqrt(2.0))
    fc2_w = xavier_normal(ks[4], (1, hidden), 1.0)
    fc2_b = np.asarray(jax.random.uniform(ks[5], (1,), jnp.float32,
                                          -1.0 / math.sqrt(hidden),
                                          1.0 / math.sqrt(hidden)))
    # conv1/2/3 biases and fc1 bias cancel exactly under the training-mode
    # BatchNorms that follow them -> omitted from the kernel entirely.

    # fresh-module BatchNorm affine parameters
    g1, b1 = np.ones(8, np.float32), np.zeros(8, np.float32)
    g2, b2 = np.ones(16, np.float32), np.zeros(16, np.float32)
    g3, b3 = np.ones(16, np.float32), np.zeros(16, np.float32)
    gf, bf = np.ones(hidden, np.float32), np.zeros(hidden, np.float32)

    # ---- packed small-parameter tile (16, 128): one DMA, sliced in-kernel ----
    psmall = np.zeros((16, 128), np.float32)
    psmall[0, :] = np.repeat(g2, 8)           # gamma2 broadcast to (c*8+s) cols
    psmall[1, :] = np.repeat(b2, 8)           # beta2  broadcast
    psmall[2, :] = np.repeat(g3, 8)           # gamma3 broadcast
    psmall[3, :] = np.repeat(b3, 8)           # beta3  broadcast
    psmall[4, :hidden] = gf                   # gamma_fc
    psmall[5, :hidden] = bf                   # beta_fc
    psmall[6, :hidden] = fc2_w.reshape(-1)    # fc2 weight (row form)
    psmall[7, 0] = fc2_b[0]                   # fc2 bias
    psmall[8:16, 0:32] = np.pad(w1.reshape(8, 27), ((0, 0), (0, 5)))  # conv1 W
    psmall[8:16, 32] = g1                     # gamma1 (column)
    psmall[8:16, 33] = b1                     # beta1  (column)

    # ---- merged (128, 288) weight slab: [ conv3 dense | P0 | fc1_w^T ] -------
    p0 = np.kron(np.eye(16, dtype=np.float32), np.ones((8, 8), np.float32))
    wbig = np.concatenate(
        [_dense_conv3d_matrix(w3, 2, 1, 1), p0, fc1_w.T.astype(np.float32)], axis=1)

    return {
        "w2d": jnp.asarray(_dense_conv3d_matrix(w2, 4, 2, 1)),   # (512, 128)
        "wbig": jnp.asarray(wbig),                               # (128, 288)
        "psmall": jnp.asarray(psmall),                           # (16, 128)
    }


if __name__ == "__main__":
    # Input 24^3 cube -> conv1(s3): 8^3 -> pool: 4^3 -> conv2(s2): 2^3
    # -> conv3(s1): 2^3  => D_in = 16*2*2*2 = 128, H = 32, batch N = 2.
    key = jax.random.PRNGKey(0)
    kx, kp = jax.random.split(key)
    x = jax.random.normal(kx, (2, 1, 24, 24, 24), jnp.float32)
    params = init_params(kp, d_in=128, hidden=32)

    # TODO(synk): BatchNorm running-stat updates (training-time side effect) are
    # not modeled; forward uses batch statistics as a fresh torch module would.
    fwd = jax.jit(total_model_forward)
    pred = jax.block_until_ready(fwd(x, params))
    assert pred.shape == (2, 1) and pred.dtype == jnp.float32
    assert bool(jnp.all(jnp.isfinite(pred)))
    print("KERNEL_OK")
</pallas_src>

<mosaic_0001>
module attributes {stable_mosaic.version = 11 : i64} {
  func.func @kernel(%arg0: memref<32x1024xf32, #tpu.memory_space<vmem>>, %arg1: memref<512x128xf32, #tpu.memory_space<vmem>>, %arg2: memref<128x288xf32, #tpu.memory_space<vmem>>, %arg3: memref<16x128xf32, #tpu.memory_space<vmem>>, %arg4: memref<2x1xf32, #tpu.memory_space<vmem>>) attributes {dimension_semantics = [], scalar_prefetch = 0 : i64, scratch_operands = 0 : i64, tpu.core_type = #tpu.core_type<tc>} {
    %c0 = arith.constant 0 : index
    %c0_0 = arith.constant 0 : index
    %0 = vector.load %arg3[%c0, %c0_0] : memref<16x128xf32, #tpu.memory_space<vmem>>, vector<16x128xf32>
    %1 = vector.extract_strided_slice %0 {offsets = [0, 0], sizes = [1, 128], strides = [1, 1]} : vector<16x128xf32> to vector<1x128xf32>
    %2 = vector.extract_strided_slice %0 {offsets = [1, 0], sizes = [1, 128], strides = [1, 1]} : vector<16x128xf32> to vector<1x128xf32>
    %3 = vector.extract_strided_slice %0 {offsets = [2, 0], sizes = [1, 128], strides = [1, 1]} : vector<16x128xf32> to vector<1x128xf32>
    %4 = vector.extract_strided_slice %0 {offsets = [3, 0], sizes = [1, 128], strides = [1, 1]} : vector<16x128xf32> to vector<1x128xf32>
    %5 = vector.extract_strided_slice %0 {offsets = [4, 0], sizes = [1, 32], strides = [1, 1]} : vector<16x128xf32> to vector<1x32xf32>
    %6 = vector.extract_strided_slice %0 {offsets = [5, 0], sizes = [1, 32], strides = [1, 1]} : vector<16x128xf32> to vector<1x32xf32>
    %7 = vector.extract_strided_slice %0 {offsets = [6, 0], sizes = [1, 32], strides = [1, 1]} : vector<16x128xf32> to vector<1x32xf32>
    %8 = vector.extract_strided_slice %0 {offsets = [7, 0], sizes = [1, 1], strides = [1, 1]} : vector<16x128xf32> to vector<1x1xf32>
    %9 = vector.extract_strided_slice %0 {offsets = [8, 0], sizes = [8, 32], strides = [1, 1]} : vector<16x128xf32> to vector<8x32xf32>
    %10 = vector.extract_strided_slice %0 {offsets = [8, 32], sizes = [8, 1], strides = [1, 1]} : vector<16x128xf32> to vector<8x1xf32>
    %11 = vector.extract_strided_slice %0 {offsets = [8, 33], sizes = [8, 1], strides = [1, 1]} : vector<16x128xf32> to vector<8x1xf32>
    %c0_1 = arith.constant 0 : index
    %c0_2 = arith.constant 0 : index
    %12 = vector.load %arg2[%c0_1, %c0_2] : memref<128x288xf32, #tpu.memory_space<vmem>>, vector<128x128xf32>
    %c0_3 = arith.constant 0 : index
    %c128 = arith.constant 128 : index
    %13 = vector.load %arg2[%c0_3, %c128] : memref<128x288xf32, #tpu.memory_space<vmem>>, vector<128x128xf32>
    %c0_4 = arith.constant 0 : index
    %c256 = arith.constant 256 : index
    %14 = vector.load %arg2[%c0_4, %c256] : memref<128x288xf32, #tpu.memory_space<vmem>>, vector<128x32xf32>
    %c0_5 = arith.constant 0 : index
    %c0_6 = arith.constant 0 : index
    %15 = vector.load %arg0[%c0_5, %c0_6] : memref<32x1024xf32, #tpu.memory_space<vmem>>, vector<32x1024xf32>
    %cst = arith.constant dense<0.000000e+00> : vector<8x1024xf32>
    %16 = tpu.matmul %9, %15, %cst {dimension_numbers = #tpu.dot_dimension_numbers<[1], [0], [0], [1], [0, 0, 1, 1], [], []>} : vector<8x32xf32>, vector<32x1024xf32>, vector<8x1024xf32> -> vector<8x1024xf32>
    %cst_7 = arith.constant dense<0.000000e+00> : vector<8xf32>
    %17 = vector.multi_reduction <add>, %16, %cst_7 [1] : vector<8x1024xf32> to vector<8xf32>
    %18 = vector.shape_cast %17 : vector<8xf32> to vector<8x1xf32>
    %cst_8 = arith.constant 9.765625E-4 : f32
    %19 = vector.broadcast %cst_8 : f32 to vector<8x1xf32>
    %20 = arith.mulf %18, %19 : vector<8x1xf32>
    %21 = arith.mulf %16, %16 : vector<8x1024xf32>
    %cst_9 = arith.constant dense<0.000000e+00> : vector<8xf32>
    %22 = vector.multi_reduction <add>, %21, %cst_9 [1] : vector<8x1024xf32> to vector<8xf32>
    %23 = vector.shape_cast %22 : vector<8xf32> to vector<8x1xf32>
    %cst_10 = arith.constant 9.765625E-4 : f32
    %24 = vector.broadcast %cst_10 : f32 to vector<8x1xf32>
    %25 = arith.mulf %23, %24 : vector<8x1xf32>
    %26 = arith.mulf %20, %20 : vector<8x1xf32>
    %27 = arith.subf %25, %26 : vector<8x1xf32>
    %cst_11 = arith.constant 9.99999974E-6 : f32
    %28 = vector.broadcast %cst_11 : f32 to vector<8x1xf32>
    %29 = arith.addf %27, %28 : vector<8x1xf32>
    %30 = math.rsqrt %29 : vector<8x1xf32>
    %31 = arith.mulf %10, %30 : vector<8x1xf32>
    %32 = arith.mulf %20, %31 : vector<8x1xf32>
    %33 = arith.subf %11, %32 : vector<8x1xf32>
    %34 = vector.extract_strided_slice %16 {offsets = [0, 0], sizes = [8, 128], strides = [1, 1]} : vector<8x1024xf32> to vector<8x128xf32>
    %35 = vector.extract_strided_slice %16 {offsets = [0, 128], sizes = [8, 128], strides = [1, 1]} : vector<8x1024xf32> to vector<8x128xf32>
    %36 = arith.maximumf %34, %35 : vector<8x128xf32>
    %37 = vector.extract_strided_slice %16 {offsets = [0, 256], sizes = [8, 128], strides = [1, 1]} : vector<8x1024xf32> to vector<8x128xf32>
    %38 = vector.extract_strided_slice %16 {offsets = [0, 384], sizes = [8, 128], strides = [1, 1]} : vector<8x1024xf32> to vector<8x128xf32>
    %39 = arith.maximumf %37, %38 : vector<8x128xf32>
    %40 = vector.extract_strided_slice %16 {offsets = [0, 512], sizes = [8, 128], strides = [1, 1]} : vector<8x1024xf32> to vector<8x128xf32>
    %41 = vector.extract_strided_slice %16 {offsets = [0, 640], sizes = [8, 128], strides = [1, 1]} : vector<8x1024xf32> to vector<8x128xf32>
    %42 = arith.maximumf %40, %41 : vector<8x128xf32>
    %43 = vector.extract_strided_slice %16 {offsets = [0, 768], sizes = [8, 128], strides = [1, 1]} : vector<8x1024xf32> to vector<8x128xf32>
    %44 = vector.extract_strided_slice %16 {offsets = [0, 896], sizes = [8, 128], strides = [1, 1]} : vector<8x1024xf32> to vector<8x128xf32>
    %45 = arith.maximumf %43, %44 : vector<8x128xf32>
    %46 = arith.maximumf %36, %39 : vector<8x128xf32>
    %47 = arith.maximumf %42, %45 : vector<8x128xf32>
    %48 = arith.maximumf %46, %47 : vector<8x128xf32>
    %49 = vector.broadcast %31 : vector<8x1xf32> to vector<8x128xf32>
    %50 = arith.mulf %48, %49 : vector<8x128xf32>
    %51 = vector.broadcast %33 : vector<8x1xf32> to vector<8x128xf32>
    %52 = arith.addf %50, %51 : vector<8x128xf32>
    %53 = vector.extract_strided_slice %52 {offsets = [0, 0], sizes = [1, 64], strides = [1, 1]} : vector<8x128xf32> to vector<1x64xf32>
    %54 = vector.extract_strided_slice %52 {offsets = [1, 0], sizes = [1, 64], strides = [1, 1]} : vector<8x128xf32> to vector<1x64xf32>
    %55 = vector.extract_strided_slice %52 {offsets = [2, 0], sizes = [1, 64], strides = [1, 1]} : vector<8x128xf32> to vector<1x64xf32>
    %56 = vector.extract_strided_slice %52 {offsets = [3, 0], sizes = [1, 64], strides = [1, 1]} : vector<8x128xf32> to vector<1x64xf32>
    %57 = vector.extract_strided_slice %52 {offsets = [4, 0], sizes = [1, 64], strides = [1, 1]} : vector<8x128xf32> to vector<1x64xf32>
    %58 = vector.extract_strided_slice %52 {offsets = [5, 0], sizes = [1, 64], strides = [1, 1]} : vector<8x128xf32> to vector<1x64xf32>
    %59 = vector.extract_strided_slice %52 {offsets = [6, 0], sizes = [1, 64], strides = [1, 1]} : vector<8x128xf32> to vector<1x64xf32>
    %60 = vector.extract_strided_slice %52 {offsets = [7, 0], sizes = [1, 64], strides = [1, 1]} : vector<8x128xf32> to vector<1x64xf32>
    %61 = tpu.concatenate %53, %54, %55, %56, %57, %58, %59, %60 in 1 : vector<1x64xf32>, vector<1x64xf32>, vector<1x64xf32>, vector<1x64xf32>, vector<1x64xf32>, vector<1x64xf32>, vector<1x64xf32>, vector<1x64xf32> -> vector<1x512xf32>
    %62 = vector.extract_strided_slice %52 {offsets = [0, 64], sizes = [1, 64], strides = [1, 1]} : vector<8x128xf32> to vector<1x64xf32>
    %63 = vector.extract_strided_slice %52 {offsets = [1, 64], sizes = [1, 64], strides = [1, 1]} : vector<8x128xf32> to vector<1x64xf32>
    %64 = vector.extract_strided_slice %52 {offsets = [2, 64], sizes = [1, 64], strides = [1, 1]} : vector<8x128xf32> to vector<1x64xf32>
    %65 = vector.extract_strided_slice %52 {offsets = [3, 64], sizes = [1, 64], strides = [1, 1]} : vector<8x128xf32> to vector<1x64xf32>
    %66 = vector.extract_strided_slice %52 {offsets = [4, 64], sizes = [1, 64], strides = [1, 1]} : vector<8x128xf32> to vector<1x64xf32>
    %67 = vector.extract_strided_slice %52 {offsets = [5, 64], sizes = [1, 64], strides = [1, 1]} : vector<8x128xf32> to vector<1x64xf32>
    %68 = vector.extract_strided_slice %52 {offsets = [6, 64], sizes = [1, 64], strides = [1, 1]} : vector<8x128xf32> to vector<1x64xf32>
    %69 = vector.extract_strided_slice %52 {offsets = [7, 64], sizes = [1, 64], strides = [1, 1]} : vector<8x128xf32> to vector<1x64xf32>
    %70 = tpu.concatenate %62, %63, %64, %65, %66, %67, %68, %69 in 1 : vector<1x64xf32>, vector<1x64xf32>, vector<1x64xf32>, vector<1x64xf32>, vector<1x64xf32>, vector<1x64xf32>, vector<1x64xf32>, vector<1x64xf32> -> vector<1x512xf32>
    %71 = tpu.concatenate %61, %70 in 0 : vector<1x512xf32>, vector<1x512xf32> -> vector<2x512xf32>
    %c0_12 = arith.constant 0 : index
    %c0_13 = arith.constant 0 : index
    %72 = vector.load %arg1[%c0_12, %c0_13] : memref<512x128xf32, #tpu.memory_space<vmem>>, vector<512x128xf32>
    %cst_14 = arith.constant dense<0.000000e+00> : vector<2x128xf32>
    %73 = tpu.matmul %71, %72, %cst_14 {dimension_numbers = #tpu.dot_dimension_numbers<[1], [0], [0], [1], [0, 0, 1, 1], [], []>} : vector<2x512xf32>, vector<512x128xf32>, vector<2x128xf32> -> vector<2x128xf32>
    %cst_15 = arith.constant dense<0.000000e+00> : vector<128xf32>
    %74 = vector.multi_reduction <add>, %73, %cst_15 [0] : vector<2x128xf32> to vector<128xf32>
    %75 = vector.shape_cast %74 : vector<128xf32> to vector<1x128xf32>
    %76 = arith.mulf %73, %73 : vector<2x128xf32>
    %cst_16 = arith.constant dense<0.000000e+00> : vector<128xf32>
    %77 = vector.multi_reduction <add>, %76, %cst_16 [0] : vector<2x128xf32> to vector<128xf32>
    %78 = vector.shape_cast %77 : vector<128xf32> to vector<1x128xf32>
    %79 = tpu.concatenate %75, %78 in 0 : vector<1x128xf32>, vector<1x128xf32> -> vector<2x128xf32>
    %cst_17 = arith.constant dense<0.000000e+00> : vector<2x128xf32>
    %80 = tpu.matmul %79, %13, %cst_17 {dimension_numbers = #tpu.dot_dimension_numbers<[1], [0], [0], [1], [0, 0, 1, 1], [], []>} : vector<2x128xf32>, vector<128x128xf32>, vector<2x128xf32> -> vector<2x128xf32>
    %cst_18 = arith.constant 6.250000e-02 : f32
    %81 = vector.broadcast %cst_18 : f32 to vector<2x128xf32>
    %82 = arith.mulf %80, %81 : vector<2x128xf32>
    %83 = vector.extract_strided_slice %82 {offsets = [0, 0], sizes = [1, 128], strides = [1, 1]} : vector<2x128xf32> to vector<1x128xf32>
    %84 = vector.extract_strided_slice %82 {offsets = [1, 0], sizes = [1, 128], strides = [1, 1]} : vector<2x128xf32> to vector<1x128xf32>
    %85 = arith.mulf %83, %83 : vector<1x128xf32>
    %86 = arith.subf %84, %85 : vector<1x128xf32>
    %87 = vector.broadcast %83 : vector<1x128xf32> to vector<2x128xf32>
    %88 = arith.subf %73, %87 : vector<2x128xf32>
    %cst_19 = arith.constant 9.99999974E-6 : f32
    %89 = vector.broadcast %cst_19 : f32 to vector<1x128xf32>
    %90 = arith.addf %86, %89 : vector<1x128xf32>
    %91 = math.rsqrt %90 : vector<1x128xf32>
    %92 = arith.mulf %1, %91 : vector<1x128xf32>
    %93 = vector.broadcast %92 : vector<1x128xf32> to vector<2x128xf32>
    %94 = arith.mulf %88, %93 : vector<2x128xf32>
    %95 = vector.broadcast %2 : vector<1x128xf32> to vector<2x128xf32>
    %96 = arith.addf %94, %95 : vector<2x128xf32>
    %cst_20 = arith.constant dense<0.000000e+00> : vector<2x128xf32>
    %97 = tpu.matmul %96, %12, %cst_20 {dimension_numbers = #tpu.dot_dimension_numbers<[1], [0], [0], [1], [0, 0, 1, 1], [], []>} : vector<2x128xf32>, vector<128x128xf32>, vector<2x128xf32> -> vector<2x128xf32>
    %cst_21 = arith.constant dense<0.000000e+00> : vector<128xf32>
    %98 = vector.multi_reduction <add>, %97, %cst_21 [0] : vector<2x128xf32> to vector<128xf32>
    %99 = vector.shape_cast %98 : vector<128xf32> to vector<1x128xf32>
    %100 = arith.mulf %97, %97 : vector<2x128xf32>
    %cst_22 = arith.constant dense<0.000000e+00> : vector<128xf32>
    %101 = vector.multi_reduction <add>, %100, %cst_22 [0] : vector<2x128xf32> to vector<128xf32>
    %102 = vector.shape_cast %101 : vector<128xf32> to vector<1x128xf32>
    %103 = tpu.concatenate %99, %102 in 0 : vector<1x128xf32>, vector<1x128xf32> -> vector<2x128xf32>
    %cst_23 = arith.constant dense<0.000000e+00> : vector<2x128xf32>
    %104 = tpu.matmul %103, %13, %cst_23 {dimension_numbers = #tpu.dot_dimension_numbers<[1], [0], [0], [1], [0, 0, 1, 1], [], []>} : vector<2x128xf32>, vector<128x128xf32>, vector<2x128xf32> -> vector<2x128xf32>
    %cst_24 = arith.constant 6.250000e-02 : f32
    %105 = vector.broadcast %cst_24 : f32 to vector<2x128xf32>
    %106 = arith.mulf %104, %105 : vector<2x128xf32>
    %107 = vector.extract_strided_slice %106 {offsets = [0, 0], sizes = [1, 128], strides = [1, 1]} : vector<2x128xf32> to vector<1x128xf32>
    %108 = vector.extract_strided_slice %106 {offsets = [1, 0], sizes = [1, 128], strides = [1, 1]} : vector<2x128xf32> to vector<1x128xf32>
    %109 = arith.mulf %107, %107 : vector<1x128xf32>
    %110 = arith.subf %108, %109 : vector<1x128xf32>
    %111 = vector.broadcast %107 : vector<1x128xf32> to vector<2x128xf32>
    %112 = arith.subf %97, %111 : vector<2x128xf32>
    %cst_25 = arith.constant 9.99999974E-6 : f32
    %113 = vector.broadcast %cst_25 : f32 to vector<1x128xf32>
    %114 = arith.addf %110, %113 : vector<1x128xf32>
    %115 = math.rsqrt %114 : vector<1x128xf32>
    %116 = arith.mulf %3, %115 : vector<1x128xf32>
    %117 = vector.broadcast %116 : vector<1x128xf32> to vector<2x128xf32>
    %118 = arith.mulf %112, %117 : vector<2x128xf32>
    %119 = vector.broadcast %4 : vector<1x128xf32> to vector<2x128xf32>
    %120 = arith.addf %118, %119 : vector<2x128xf32>
    %cst_26 = arith.constant dense<0.000000e+00> : vector<2x32xf32>
    %121 = tpu.matmul %120, %14, %cst_26 {dimension_numbers = #tpu.dot_dimension_numbers<[1], [0], [0], [1], [0, 0, 1, 1], [], []>} : vector<2x128xf32>, vector<128x32xf32>, vector<2x32xf32> -> vector<2x32xf32>
    %cst_27 = arith.constant dense<0.000000e+00> : vector<32xf32>
    %122 = vector.multi_reduction <add>, %121, %cst_27 [0] : vector<2x32xf32> to vector<32xf32>
    %123 = vector.shape_cast %122 : vector<32xf32> to vector<1x32xf32>
    %cst_28 = arith.constant 5.000000e-01 : f32
    %124 = vector.broadcast %cst_28 : f32 to vector<1x32xf32>
    %125 = arith.mulf %123, %124 : vector<1x32xf32>
    %126 = arith.mulf %121, %121 : vector<2x32xf32>
    %cst_29 = arith.constant dense<0.000000e+00> : vector<32xf32>
    %127 = vector.multi_reduction <add>, %126, %cst_29 [0] : vector<2x32xf32> to vector<32xf32>
    %128 = vector.shape_cast %127 : vector<32xf32> to vector<1x32xf32>
    %cst_30 = arith.constant 5.000000e-01 : f32
    %129 = vector.broadcast %cst_30 : f32 to vector<1x32xf32>
    %130 = arith.mulf %128, %129 : vector<1x32xf32>
    %131 = arith.mulf %125, %125 : vector<1x32xf32>
    %132 = arith.subf %130, %131 : vector<1x32xf32>
    %133 = vector.broadcast %125 : vector<1x32xf32> to vector<2x32xf32>
    %134 = arith.subf %121, %133 : vector<2x32xf32>
    %cst_31 = arith.constant 9.99999974E-6 : f32
    %135 = vector.broadcast %cst_31 : f32 to vector<1x32xf32>
    %136 = arith.addf %132, %135 : vector<1x32xf32>
    %137 = math.rsqrt %136 : vector<1x32xf32>
    %138 = arith.mulf %5, %137 : vector<1x32xf32>
    %139 = vector.broadcast %138 : vector<1x32xf32> to vector<2x32xf32>
    %140 = arith.mulf %134, %139 : vector<2x32xf32>
    %141 = vector.broadcast %6 : vector<1x32xf32> to vector<2x32xf32>
    %142 = arith.addf %140, %141 : vector<2x32xf32>
    %cst_32 = arith.constant 0.000000e+00 : f32
    %143 = vector.broadcast %cst_32 : f32 to vector<2x32xf32>
    %144 = arith.maximumf %142, %143 : vector<2x32xf32>
    %145 = vector.broadcast %7 : vector<1x32xf32> to vector<2x32xf32>
    %146 = arith.mulf %144, %145 : vector<2x32xf32>
    %cst_33 = arith.constant dense<0.000000e+00> : vector<2xf32>
    %147 = vector.multi_reduction <add>, %146, %cst_33 [1] : vector<2x32xf32> to vector<2xf32>
    %148 = vector.shape_cast %147 : vector<2xf32> to vector<2x1xf32>
    %149 = vector.broadcast %8 : vector<1x1xf32> to vector<2x1xf32>
    %150 = arith.addf %148, %149 : vector<2x1xf32>
    %c0_34 = arith.constant 0 : index
    %c0_35 = arith.constant 0 : index
    %151 = vector.load %arg4[%c0_34, %c0_35] : memref<2x1xf32, #tpu.memory_space<vmem>>, vector<2x1xf32>
    tpu.vector_store %arg4[%c0_34, %c0_35], %150 {strides = array<i32>} : memref<2x1xf32, #tpu.memory_space<vmem>>, vector<2x1xf32>,
    return
  }
}

</mosaic_0001>

<bundles_post_ra>
// kernel: total_model_forward.1
= control target key start
LH: loop header
LB: loop body
LE: loop exit
PB: predicated region body
PF: predicated region fallthrough
CT: control target
= control target key end

     0   :  { %v1646_v3 = vmov 0.0   ;;  %vm99_vm0 = vcmask 261120   ;;  %s1650_s23 = smov 64   ;;  %vm468_vm1 = vcmask 523264   ;;  %vm505_vm2 = vcmask 1040384   ;;  %s2265_s0 = inlined_call_operand.vmem [shape: f32[32,1024], index: 0, kind: input, shape index: {}]   ;;  %s2266_s3 = inlined_call_operand.vmem [shape: f32[16,128], index: 3, kind: input, shape index: {}]   ;;  %s2267_s1 = inlined_call_operand.vmem [shape: f32[512,128], index: 1, kind: input, shape index: {}]   ;;  %s2268_s2 = inlined_call_operand.vmem [shape: f32[128,288], index: 2, kind: input, shape index: {}]   ;;  %s2269_s4 = inlined_call_operand.vmem [shape: f32[2,1], index: 4, kind: output, shape index: {}]  }
   0x1   :  { %v68_v0 = vld [vmem:[%s2265_s0 + $0x8] sm:$0xff]  ;;  %v70_v2 = vld [vmem:[%s2265_s0 + $0x18] sm:$0xff]  ;;  %167 = vmatprep.mubr.f32.mxu0 %v1646_v3  ;;  %238 = vmatprep.mubr.f32.mxu1 %v1646_v3  ;;  %v67_v6 = vld [vmem:[%s2265_s0] sm:$0xff]  ;;  %vm1652_vm3 = vmmov 0   ;;  %vm714_vm4 = vcmask 1041408   ;;  %vm1081_vm5 = vcmask 254976  }
   0x2   :  { %v76_v1 = vld [vmem:[%s2265_s0 + $0x48] sm:$0xff]  ;;  %v78_v5 = vld [vmem:[%s2265_s0 + $0x58] sm:$0xff]  ;;  %v75_v7 = vld [vmem:[%s2265_s0 + $0x40] sm:$0xff]  ;;  %vm1129_vm6 = vcmask 1024  }
   0x3   :  { %v1417_v4 = vpack.c.bf16 %v76_v1, %v68_v0  ;;  %v1425_v8 = vpack.c.bf16 %v78_v5, %v70_v2  ;;  %v1419_v9 = vpack.c.bf16 %v75_v7, %v67_v6  ;;  %v69_v10 = vld [vmem:[%s2265_s0 + $0x10] sm:$0xff]  ;;  %v84_v12 = vld [vmem:[%s2265_s0 + $0x88] sm:$0xff]  ;;  %v86_v15 = vld [vmem:[%s2265_s0 + $0x98] sm:$0xff] }
   0x4   :  { %v77_v11 = vld [vmem:[%s2265_s0 + $0x50] sm:$0xff]  ;;  %v92_v14 = vld [vmem:[%s2265_s0 + $0xc8] sm:$0xff]  ;;  %v94_v16 = vld [vmem:[%s2265_s0 + $0xd8] sm:$0xff] }
   0x5   :  { %1418 = vmatprep.subr.bf16.mxu0 %v1417_v4  ;;  %v1427_v13 = vpack.c.bf16 %v77_v11, %v69_v10  ;;  %1426 = vmatprep.subr.bf16.mxu1 %v1425_v8  ;;  %v1421_v17 = vpack.c.bf16 %v92_v14, %v84_v12  ;;  %v1429_v18 = vpack.c.bf16 %v94_v16, %v86_v15  ;;  %v83_v19 = vld [vmem:[%s2265_s0 + $0x80] sm:$0xff]  ;;  %v85_v21 = vld [vmem:[%s2265_s0 + $0x90] sm:$0xff]  ;;  %v1731_v25 = vld [vmem:[%s2266_s3 + $0x8] sm:$0xff] }
   0x6   :  { %1420 = vmatpush1.bf16.msra.mxu0 %v1419_v9  ;;  %v91_v20 = vld [vmem:[%s2265_s0 + $0xc0] sm:$0xff]  ;;  %v93_v23 = vld [vmem:[%s2265_s0 + $0xd0] sm:$0xff]  ;;  %v72_v26 = vld [vmem:[%s2265_s0 + $0x28] sm:$0xff] }
   0x7   :  { %1428 = vmatpush1.bf16.msra.mxu1 %v1427_v13  ;;  %v1423_v22 = vpack.c.bf16 %v91_v20, %v83_v19  ;;  %1422 = vmatprep.subr.bf16.mxu0 %v1421_v17  ;;  %v1431_v24 = vpack.c.bf16 %v93_v23, %v85_v21  ;;  %v80_v27 = vld [vmem:[%s2265_s0 + $0x68] sm:$0xff]  ;;  %v74_v28 = vld [vmem:[%s2265_s0 + $0x38] sm:$0xff]  ;;  %v71_v31 = vld [vmem:[%s2265_s0 + $0x20] sm:$0xff] }
   0x8   :  { %1430 = vmatprep.subr.bf16.mxu1 %v1429_v18  ;;  %v1433_v29 = vpack.c.bf16 %v80_v27, %v72_v26  ;;  %v82_v30 = vld [vmem:[%s2265_s0 + $0x78] sm:$0xff]  ;;  %v79_v32 = vld [vmem:[%s2265_s0 + $0x60] sm:$0xff]  ;;  %v73_v35 = vld [vmem:[%s2265_s0 + $0x30] sm:$0xff] }
   0x9   :  { %v1441_v33 = vpack.c.bf16 %v82_v30, %v74_v28  ;;  %v1435_v34 = vpack.c.bf16 %v79_v32, %v71_v31  ;;  %v81_v36 = vld [vmem:[%s2265_s0 + $0x70] sm:$0xff]  ;;  %v88_v37 = vld [vmem:[%s2265_s0 + $0xa8] sm:$0xff]  ;;  %v90_v40 = vld [vmem:[%s2265_s0 + $0xb8] sm:$0xff] }
   0xa   :  { %1424 = vmatpush1.bf16.msra.mxu0 %v1423_v22  ;;  %v1443_v38 = vpack.c.bf16 %v81_v36, %v73_v35  ;;  %v96_v39 = vld [vmem:[%s2265_s0 + $0xe8] sm:$0xff]  ;;  %v98_v41 = vld [vmem:[%s2265_s0 + $0xf8] sm:$0xff]  ;;  %v87_v44 = vld [vmem:[%s2265_s0 + $0xa0] sm:$0xff] }
   0xb   :  { %1432 = vmatpush1.bf16.msra.mxu1 %v1431_v24  ;;  %1434 = vmatprep.subr.bf16.mxu0 %v1433_v29  ;;  %v1437_v42 = vpack.c.bf16 %v96_v39, %v88_v37  ;;  %v1445_v43 = vpack.c.bf16 %v98_v41, %v90_v40  ;;  %v95_v45 = vld [vmem:[%s2265_s0 + $0xe0] sm:$0xff]  ;;  %v89_v46 = vld [vmem:[%s2265_s0 + $0xb0] sm:$0xff]  ;;  %v1647_v24 = vmov 32   ;;  %v527_v40 = vld [vmem:[%s2267_s1 + $0x88] sm:$0xff] }
   0xc   :  { %1442 = vmatprep.subr.bf16.mxu1 %v1441_v33  ;;  %v97_v47 = vld [vmem:[%s2265_s0 + $0xf0] sm:$0xff]  ;;  %v1439_v48 = vpack.c.bf16 %v95_v45, %v87_v44  ;;  %1616 = vset.pattern.permute.xlu1 %v1647_v24  ;;  %v1648_v33 = vmov 33   ;;  %s1649_s0 = smov 1   ;;  %v526_v39 = vld [vmem:[%s2267_s1 + $0x80] sm:$0xff]  ;;  %v511_v44 = vld [vmem:[%s2267_s1 + $0x8] sm:$0xff] }
   0xd   :  { %1135 = vmatmul.mubr.msk.f32.vlgmr.msra.gmra.mrb[0].mxu0 %vm99_vm0, %v1731_v25  ;;  %v1447_v49 = vpack.c.bf16 %v97_v47, %v89_v46  ;;  %1617 = vset.pattern.permute.xlu0 %v1648_v33  ;;  %v558_v41 = vld [vmem:[%s2267_s1 + $0x180] sm:$0xff]  ;;  %v519_v33 = vld [vmem:[%s2267_s1 + $0x48] sm:$0xff] }
   0xe   :  { %1136 = vmatmul.mubr.msk.f32.vlgmr.msra.gmra.mrb[0].mxu1 %vm99_vm0, %v1731_v25  ;;  %1436 = vmatpush1.bf16.msra.mxu0 %v1435_v34  ;;  %v542_v47 = vld [vmem:[%s2267_s1 + $0x100] sm:$0xff] }
   0xf   :  { %1444 = vmatpush1.bf16.msra.mxu1 %v1443_v38  ;;  %1438 = vmatprep.subr.bf16.mxu0 %v1437_v42  ;;  %v1449_v42 = vpack.c.bf16 %v527_v40, %v526_v39  ;;  %v536_v40 = vld [vmem:[%s2267_s1 + $0xd0] sm:$0xff] }
  0x10   :  { %1446 = vmatprep.subr.bf16.mxu1 %v1445_v43  ;;  %309 = vmatprep.mubr.f32.mxu0 %v1646_v3  ;;  %v559_v43 = vld [vmem:[%s2267_s1 + $0x188] sm:$0xff] }
  0x11   :  { %380 = vmatprep.mubr.f32.mxu1 %v1646_v3  ;;  %v1481_v45 = vpack.c.bf16 %v559_v43, %v558_v41  ;;  %v537_v41 = vld [vmem:[%s2267_s1 + $0xd8] sm:$0xff] }
  0x12   :  { %1440 = vmatpush1.bf16.msra.mxu0 %v1439_v48  ;;  %v543_v48 = vld [vmem:[%s2267_s1 + $0x108] sm:$0xff]  ;;  %v1469_v43 = vpack.c.bf16 %v537_v41, %v536_v40 }
  0x13   :  { %1448 = vmatpush1.bf16.msra.mxu1 %v1447_v49  ;;  %v528_v49 = vld [vmem:[%s2267_s1 + $0x90] sm:$0xff]  ;;  %1450 = vmatprep.subr.bf16.mxu0 %v1449_v42 }
  0x14   :  { %1482 = vmatprep.subr.bf16.mxu1 %v1481_v45  ;;  %v568_v42 = vld [vmem:[%s2267_s1 + $0x1d0] sm:$0xff]  ;;  %v521_v45 = vld [vmem:[%s2267_s1 + $0x58] sm:$0xff] }
  0x15   :  { %1137 = vmatmul.mubr.msk.f32.vlgmr.msra.gmra.mrb[2].mxu0 %vm99_vm0, %v1731_v25 }
  0x16   :  { %1138 = vmatmul.mubr.msk.f32.vlgmr.msra.gmra.mrb[2].mxu1 %vm99_vm0, %v1731_v25 }
  0xe0   :  { %v169_v50 = vpop.f32.mrb[0].mxu0 }
  0xe1   :  { %v397_v51 = vmul.f32 %v169_v50, %v169_v50  ;;  %v240_v52 = vpop.f32.mrb[0].mxu1  ;;  %v171_v53 = vpop.f32.mrb[1].mxu0 }
  0xe2   :  { %v399_v54 = vmul.f32 %v240_v52, %v240_v52  ;;  %v387_v55 = vadd.f32 %v171_v53, %v169_v50  ;;  %v398_v56 = vmul.f32 %v171_v53, %v171_v53  ;;  %v426_v57 = vmax.f32 %v169_v50, %v171_v53  ;;  %v242_v58 = vpop.f32.mrb[1].mxu1  ;;  %v561_v53 = vld [vmem:[%s2267_s1 + $0x198] sm:$0xff] }
  0xe3   :  { %v427_v59 = vmax.f32 %v240_v52, %v242_v58  ;;  %v400_v62 = vmul.f32 %v242_v58, %v242_v58  ;;  %v1483_v50 = vpack.c.bf16 %v543_v48, %v542_v47  ;;  %v552_v48 = vld [vmem:[%s2267_s1 + $0x150] sm:$0xff] }
  0xe4   :  { %v405_v60 = vadd.f32 %v398_v56, %v397_v51  ;;  %v388_v61 = vadd.f32 %v387_v55, %v240_v52  ;;  %v529_v51 = vld [vmem:[%s2267_s1 + $0x98] sm:$0xff]  ;;  %v560_v52 = vld [vmem:[%s2267_s1 + $0x190] sm:$0xff] }
  0xe5   :  { %v1791_v63 = vmax.f32 %v426_v57, %v427_v59  ;;  %v1485_v55 = vpack.c.bf16 %v561_v53, %v560_v52  ;;  %v512_v56 = vld [vmem:[%s2267_s1 + $0x10] sm:$0xff]  ;;  %v513_v57 = vld [vmem:[%s2267_s1 + $0x18] sm:$0xff]  ;;  %1484 = vmatpush3.bf16.msra.mxu1 %v1483_v50  ;;  %v538_v53 = vld [vmem:[%s2267_s1 + $0xe0] sm:$0xff] }
  0xe6   :  { %v389_v0 = vadd.f32 %v388_v61, %v242_v58  ;;  %v406_v1 = vadd.f32 %v405_v60, %v399_v54  ;;  %v1453_v54 = vpack.c.bf16 %v529_v51, %v528_v49  ;;  %v544_v58 = vld [vmem:[%s2267_s1 + $0x110] sm:$0xff]  ;;  %v1455_v59 = vpack.c.bf16 %v513_v57, %v512_v56  ;;  %v545_v60 = vld [vmem:[%s2267_s1 + $0x118] sm:$0xff]  ;;  %v530_v61 = vld [vmem:[%s2267_s1 + $0xa0] sm:$0xff] }
  0xe7   :  { %1486 = vmatprep.subr.bf16.mxu1 %v1485_v55  ;;  %v553_v49 = vld [vmem:[%s2267_s1 + $0x158] sm:$0xff]  ;;  %v570_v55 = vld [vmem:[%s2267_s1 + $0x1e0] sm:$0xff]  ;;  %v523_v57 = vld [vmem:[%s2267_s1 + $0x68] sm:$0xff] }
  0xe8   :  { %v407_v2 = vadd.f32 %v406_v1, %v400_v62  ;;  %v311_v4 = vpop.f32.mrb[2].mxu0  ;;  %v531_v62 = vld [vmem:[%s2267_s1 + $0xa8] sm:$0xff]  ;;  %v1503_v51 = vpack.c.bf16 %v553_v49, %v552_v48 }
  0xe9   :  { %v390_v5 = vadd.f32 %v389_v0, %v311_v4  ;;  %v401_v6 = vmul.f32 %v311_v4, %v311_v4  ;;  %v382_v7 = vpop.f32.mrb[2].mxu1  ;;  %v313_v8 = vpop.f32.mrb[3].mxu0  ;;  %v1487_v0 = vpack.c.bf16 %v545_v60, %v544_v58  ;;  %v1457_v1 = vpack.c.bf16 %v531_v62, %v530_v61  ;;  %v554_v60 = vld [vmem:[%s2267_s1 + $0x160] sm:$0xff]  ;;  %v555_v61 = vld [vmem:[%s2267_s1 + $0x168] sm:$0xff] }
  0xea   :  { %v402_v9 = vmul.f32 %v313_v8, %v313_v8  ;;  %v428_v10 = vmax.f32 %v311_v4, %v313_v8  ;;  %v384_v11 = vpop.f32.mrb[3].mxu1  ;;  %v403_v13 = vmul.f32 %v382_v7, %v382_v7  ;;  %v563_v4 = vld [vmem:[%s2267_s1 + $0x1a8] sm:$0xff] }
  0xeb   :  { %v408_v12 = vadd.f32 %v407_v2, %v401_v6  ;;  %v391_v14 = vadd.f32 %v390_v5, %v313_v8  ;;  %v429_v15 = vmax.f32 %v382_v7, %v384_v11  ;;  %v404_v20 = vmul.f32 %v384_v11, %v384_v11  ;;  %v562_v2 = vld [vmem:[%s2267_s1 + $0x1a0] sm:$0xff]  ;;  %1488 = vmatpush3.bf16.msra.mxu1 %v1487_v0 }
  0xec   :  { %v514_v5 = vld [vmem:[%s2267_s1 + $0x20] sm:$0xff]  ;;  %v1489_v6 = vpack.c.bf16 %v563_v4, %v562_v2  ;;  %v540_v2 = vld [vmem:[%s2267_s1 + $0xf0] sm:$0xff]  ;;  %v541_v4 = vld [vmem:[%s2267_s1 + $0xf8] sm:$0xff] }
  0xed   :  { %v392_v16 = vadd.f32 %v391_v14, %v382_v7  ;;  %v409_v17 = vadd.f32 %v408_v12, %v402_v9  ;;  %v1793_v18 = vmax.f32 %v428_v10, %v429_v15  ;;  %v515_v7 = vld [vmem:[%s2267_s1 + $0x28] sm:$0xff]  ;;  %v546_v8 = vld [vmem:[%s2267_s1 + $0x120] sm:$0xff]  ;;  %v533_v12 = vld [vmem:[%s2267_s1 + $0xb8] sm:$0xff] }
  0xee   :  { %v547_v9 = vld [vmem:[%s2267_s1 + $0x128] sm:$0xff]  ;;  %v1459_v10 = vpack.c.bf16 %v515_v7, %v514_v5  ;;  %1490 = vmatprep.subr.bf16.mxu1 %v1489_v6  ;;  %v572_v5 = vld [vmem:[%s2267_s1 + $0x1f0] sm:$0xff] }
  0xef   :  { %v393_v19 = vadd.f32 %v392_v16, %v384_v11  ;;  %v410_v21 = vadd.f32 %v409_v17, %v403_v13  ;;  %v432_v22 = vmax.f32 %v1791_v63, %v1793_v18  ;;  %v532_v11 = vld [vmem:[%s2267_s1 + $0xb0] sm:$0xff]  ;;  %v1491_v14 = vpack.c.bf16 %v547_v9, %v546_v8  ;;  %v565_v16 = vld [vmem:[%s2267_s1 + $0x1b8] sm:$0xff]  ;;  %v571_v18 = vld [vmem:[%s2267_s1 + $0x1e8] sm:$0xff] }
  0xf0   :  { %v564_v13 = vld [vmem:[%s2267_s1 + $0x1b0] sm:$0xff]  ;;  %v1461_v15 = vpack.c.bf16 %v533_v12, %v532_v11  ;;  %v1505_v58 = vpack.c.bf16 %v571_v18, %v570_v55  ;;  %v1477_v8 = vpack.c.bf16 %v541_v4, %v540_v2  ;;  %v573_v9 = vld [vmem:[%s2267_s1 + $0x1f8] sm:$0xff]  ;;  %v44_v2 = vld [vmem:[%s2268_s2 + $0xe0] sm:$0xff] }
  0xf1   :  { %394 = vadd.xlane.f32.xlu0 %v393_v19  ;;  %v411_v23 = vadd.f32 %v410_v21, %v404_v20  ;;  %v516_v17 = vld [vmem:[%s2267_s1 + $0x30] sm:$0xff]  ;;  %v517_v19 = vld [vmem:[%s2267_s1 + $0x38] sm:$0xff]  ;;  %v1493_v20 = vpack.c.bf16 %v565_v16, %v564_v13  ;;  %1492 = vmatpush3.bf16.msra.mxu1 %v1491_v14  ;;  %v1509_v12 = vpack.c.bf16 %v573_v9, %v572_v5  ;;  %v48_v9 = vld [vmem:[%s2268_s2 + $0x140] sm:$0xff] }
  0xf2   :  { %v548_v21 = vld [vmem:[%s2267_s1 + $0x130] sm:$0xff]  ;;  %v1463_v24 = vpack.c.bf16 %v517_v19, %v516_v17  ;;  %v525_v11 = vld [vmem:[%s2267_s1 + $0x78] sm:$0xff] }
  0xf3   :  { %1494 = vmatprep.subr.bf16.mxu1 %v1493_v20  ;;  %v556_v14 = vld [vmem:[%s2267_s1 + $0x170] sm:$0xff]  ;;  %v45_v5 = vld [vmem:[%s2268_s2 + $0xf8] sm:$0xff] }
  0xf4   :  { %v38_v18 = vld [vmem:[%s2268_s2 + $0x50] sm:$0xff] }
  0xf5   :  { %412 = vadd.xlane.f32.xlu0 %v411_v23  ;;  %v549_v23 = vld [vmem:[%s2267_s1 + $0x138] sm:$0xff] }
 0x17e   :  { %v395_v26 = vpop.xlane.xlu0 %394 }
 0x17f   :  { %v396_v27 = vmul.f32 0.0009765625, %v395_v26  ;;  %v1495_v26 = vpack.c.bf16 %v549_v23, %v548_v21  ;;  %v1651_v21 = vmov 0.0|0.0  }
 0x181   :  { %v415_v29 = vmul.f32 %v396_v27, %v396_v27  ;;  %1496 = vmatpush3.bf16.msra.mxu1 %v1495_v26 }
 0x182   :  { %v413_v28 = vpop.xlane.xlu0 %412 }
 0x183   :  { %v414_v30 = vmul.f32 0.0009765625, %v413_v28  ;;  %v535_v28 = vld [vmem:[%s2267_s1 + $0xc8] sm:$0xff] }
 0x185   :  { %v416_v31 = vsub.f32 %v414_v30, %v415_v29  ;;  %v566_v29 = vld [vmem:[%s2267_s1 + $0x1c0] sm:$0xff] }
 0x187   :  { %v417_v32 = vadd.f32 1e-05, %v416_v31  ;;  %v567_v31 = vld [vmem:[%s2267_s1 + $0x1c8] sm:$0xff] }
 0x189   :  { %1638 = vrsqrt.f32 %v417_v32  ;;  %v518_v32 = vld [vmem:[%s2267_s1 + $0x40] sm:$0xff] }
 0x193   :  { %v1639_v34 = vpop.eup %1638 }
 0x194   :  { %v419_v35 = vmul.f32 %v1639_v34, %v1731_v25  ;;  %v1497_v34 = vpack.c.bf16 %v567_v31, %v566_v29 }
 0x196   :  { %v420_v36 = vmul.f32 %v419_v35, %v396_v27  ;;  %v534_v27 = vld [vmem:[%s2267_s1 + $0xc0] sm:$0xff]  ;;  %1498 = vmatprep.subr.bf16.mxu1 %v1497_v34 }
 0x197   :  { %v1465_v30 = vpack.c.bf16 %v535_v28, %v534_v27 }
 0x198   :  { %422 = vrot.lane.b32.xlu1 %v420_v36, %s1649_s0  ;;  %v550_v36 = vld [vmem:[%s2267_s1 + $0x140] sm:$0xff] }
 0x19c   :  { %435 = vperm.xlu1 %1616, %v419_v35   ;;  %v1467_v35 = vpack.c.bf16 %v519_v33, %v518_v32 }
 0x20a   :  { %v423_v37 = vpop.permute.xlu1 %422 }
 0x20b   :  { %v425_v38 = vsub.f32 %v1731_v25, %v423_v37  ;;  %v510_v25 = vld [vmem:[%s2267_s1] sm:$0xff]  ;;  %v551_v37 = vld [vmem:[%s2267_s1 + $0x148] sm:$0xff] }
 0x20c   :  { %v1451_v46 = vpack.c.bf16 %v511_v44, %v510_v25  ;;  %v569_v25 = vld [vmem:[%s2267_s1 + $0x1d8] sm:$0xff]  ;;  %v520_v44 = vld [vmem:[%s2267_s1 + $0x50] sm:$0xff] }
 0x20d   :  { %441 = vperm.xlu0 %1617, %v425_v38   ;;  %v1499_v38 = vpack.c.bf16 %v551_v37, %v550_v36  ;;  %v1471_v47 = vpack.c.bf16 %v521_v45, %v520_v44  ;;  %v35_v44 = vld [vmem:[%s2268_s2 + $0x8] sm:$0xff]  ;;  %v36_v45 = vld [vmem:[%s2268_s2 + $0x20] sm:$0xff] }
 0x20e   :  { %1452 = vmatpush3.bf16.msra.mxu0 %v1451_v46  ;;  %v1501_v46 = vpack.c.bf16 %v569_v25, %v568_v42 }
 0x20f   :  { %1454 = vmatprep.subr.bf16.mxu0 %v1453_v54  ;;  %1500 = vmatpush3.bf16.msra.mxu1 %v1499_v38  ;;  %v539_v54 = vld [vmem:[%s2267_s1 + $0xe8] sm:$0xff] }
 0x210   :  { %1502 = vmatprep.subr.bf16.mxu1 %v1501_v46  ;;  %v1473_v63 = vpack.c.bf16 %v539_v54, %v538_v53  ;;  %v2022_v53 = vpack.c.bf16 %v36_v45, %v35_v44  ;;  %v22_v44 = vld [vmem:[%s2268_s2 + $0x48] sm:$0xff] }
 0x212   :  { %1456 = vmatpush3.bf16.msra.mxu0 %v1455_v59 }
 0x213   :  { %1458 = vmatprep.subr.bf16.mxu0 %v1457_v1  ;;  %1504 = vmatpush3.bf16.msra.mxu1 %v1503_v51  ;;  %v1507_v1 = vpack.c.bf16 %v555_v61, %v554_v60  ;;  %v41_v61 = vld [vmem:[%s2268_s2 + $0x98] sm:$0xff] }
 0x214   :  { %1506 = vmatprep.subr.bf16.mxu1 %v1505_v58 }
 0x216   :  { %1460 = vmatpush3.bf16.msra.mxu0 %v1459_v10  ;;  %v524_v10 = vld [vmem:[%s2267_s1 + $0x70] sm:$0xff] }
 0x217   :  { %1462 = vmatprep.subr.bf16.mxu0 %v1461_v15  ;;  %1508 = vmatpush3.bf16.msra.mxu1 %v1507_v1  ;;  %v1479_v13 = vpack.c.bf16 %v525_v11, %v524_v10  ;;  %v557_v15 = vld [vmem:[%s2267_s1 + $0x178] sm:$0xff]  ;;  %v43_v1 = vld [vmem:[%s2268_s2 + $0xc8] sm:$0xff] }
 0x218   :  { %v1511_v16 = vpack.c.bf16 %v557_v15, %v556_v14  ;;  %1510 = vmatprep.subr.bf16.mxu1 %v1509_v12  ;;  %v1526_v4 = vpack.c.bf16 %v44_v2, %v43_v1  ;;  %v49_v11 = vld [vmem:[%s2268_s2 + $0x158] sm:$0xff]  ;;  %v50_v12 = vld [vmem:[%s2268_s2 + $0x170] sm:$0xff] }
 0x21a   :  { %1464 = vmatpush3.bf16.msra.mxu0 %v1463_v24 }
 0x21b   :  { %1466 = vmatprep.subr.bf16.mxu0 %v1465_v30  ;;  %v436_v39 = vpop.permute.xlu1 %435  ;;  %1512 = vmatpush3.bf16.msra.mxu1 %v1511_v16 }
 0x21c   :  { %v438_v50 = vmul.f32 %v436_v39, %v432_v22  ;;  %v522_v22 = vld [vmem:[%s2267_s1 + $0x60] sm:$0xff]  ;;  %1537 = vmatprep.subr.bf16.mxu1 %v1651_v21 }
 0x21d   :  { %v1475_v59 = vpack.c.bf16 %v523_v57, %v522_v22 }
 0x21e   :  { %1468 = vmatpush3.bf16.msra.mxu0 %v1467_v35 }
 0x21f   :  { %1470 = vmatprep.subr.bf16.mxu0 %v1469_v43 }
 0x222   :  { %1472 = vmatpush3.bf16.msra.mxu0 %v1471_v47 }
 0x223   :  { %1474 = vmatprep.subr.bf16.mxu0 %v1473_v63  ;;  %v37_v63 = vld [vmem:[%s2268_s2 + $0x38] sm:$0xff] }
 0x224   :  { %v2038_v58 = vpack.c.bf16 %v38_v18, %v37_v63  ;;  %v30_v63 = vld [vmem:[%s2268_s2 + $0x108] sm:$0xff] }
 0x226   :  { %1476 = vmatpush3.bf16.msra.mxu0 %v1475_v59  ;;  %v40_v59 = vld [vmem:[%s2268_s2 + $0x80] sm:$0xff] }
 0x227   :  { %1478 = vmatprep.subr.bf16.mxu0 %v1477_v8  ;;  %v47_v8 = vld [vmem:[%s2268_s2 + $0x128] sm:$0xff] }
 0x228   :  { %v1532_v10 = vpack.c.bf16 %v48_v9, %v47_v8 }
 0x22a   :  { %1480 = vmatpush3.bf16.msra.mxu0 %v1479_v13  ;;  %v1535_v13 = vpack.c.bf16 %v50_v12, %v49_v11 }
 0x22b   :  { %1513 = vmatprep.subr.bf16.mxu0 %v1651_v21 }
 0x28c   :  { %v442_v52 = vpop.permute.xlu0 %441 }
 0x28d   :  { %v1955_v56 = vadd.f32 %v442_v52, %v438_v50 }
 0x28f   :  { %v450_v62 = vrot.slane %v1955_v56, 2  ;;  %v462_v0 = vrot.slane %v1955_v56, 6  ;;  %v456_v7 = vrot.slane %v1955_v56, 4  ;;  %v452_v19 = vrot.slane %v1955_v56, 3 }
 0x290   :  { %v464_v20 = vrot.slane %v1955_v56, 7  ;;  %v446_v24 = vrot.slane %v1955_v56, 1  ;;  %v458_v26 = vrot.slane %v1955_v56, 5 }
 0x291   :  { %v1618_v6 = vpack.i.bf16 %v462_v0, %v450_v62  ;;  %v1623_v17 = vpack.i.bf16 %v456_v7, %v1955_v56 }
 0x292   :  { %v1628_v23 = vpack.i.bf16 %v464_v20, %v452_v19  ;;  %v1633_v27 = vpack.i.bf16 %v458_v26, %v446_v24 }
 0x293   :  { %1619 = vrot.lane.b32.xlu1 %v1618_v6, %s1650_s23  ;;  %v46_v6 = vld [vmem:[%s2268_s2 + $0x110] sm:$0xff] }
 0x297   :  { %1624 = vrot.lane.b32.xlu1 %v1623_v17, %s1650_s23 }
 0x29b   :  { %1629 = vrot.lane.b32.xlu1 %v1628_v23, %s1650_s23 }
 0x29f   :  { %1634 = vrot.lane.b32.xlu1 %v1633_v27, %s1650_s23 }
 0x305   :  { %v1620_v28 = vpop.permute.xlu1 %1619 }
 0x306   :  { %v1622_v29 = vunpack.i.h.bf16 %v1620_v28  ;;  %v1621_v30 = vunpack.i.l.bf16 %v1620_v28 }
 0x308   :  { %v492_v32 = vsel %vm468_vm1, %v1622_v29, %v464_v20  ;;  %v490_v33 = vsel %vm468_vm1, %v1621_v30, %v452_v19 }
 0x309   :  { %v1625_v31 = vpop.permute.xlu1 %1624  ;;  %v498_v39 = vrot.slane %v490_v33, 7  ;;  %v500_v40 = vrot.slane %v492_v32, 7 }
 0x30a   :  { %v1627_v34 = vunpack.i.h.bf16 %v1625_v31  ;;  %v1626_v35 = vunpack.i.l.bf16 %v1625_v31 }
 0x30c   :  { %v491_v41 = vsel %vm468_vm1, %v1627_v34, %v458_v26  ;;  %v489_v42 = vsel %vm468_vm1, %v1626_v35, %v446_v24 }
 0x30d   :  { %v1630_v36 = vpop.permute.xlu1 %1629  ;;  %v499_v51 = vrot.slane %v491_v41, 7  ;;  %v497_v52 = vrot.slane %v489_v42, 7  ;;  %v19_v41 = vld [vmem:[%s2268_s2] sm:$0xff]  ;;  %v20_v42 = vld [vmem:[%s2268_s2 + $0x18] sm:$0xff] }
 0x30e   :  { %v1632_v37 = vunpack.i.h.bf16 %v1630_v36  ;;  %v1631_v38 = vunpack.i.l.bf16 %v1630_v36 }
 0x310   :  { %v470_v43 = vsel %vm468_vm1, %v450_v62, %v1631_v38  ;;  %v472_v25 = vsel %vm468_vm1, %v462_v0, %v1632_v37  ;;  %v42_v62 = vld [vmem:[%s2268_s2 + $0xb0] sm:$0xff] }
 0x311   :  { %v1635_v46 = vpop.permute.xlu1 %1634  ;;  %v507_v47 = vsel %vm505_vm2, %v470_v43, %v498_v39  ;;  %v509_v48 = vsel %vm505_vm2, %v472_v25, %v500_v40  ;;  %v1523_v0 = vpack.c.bf16 %v42_v62, %v41_v61  ;;  %v1538_v43 = vpack.c.bf16 %v20_v42, %v19_v41  ;;  %v21_v25 = vld [vmem:[%s2268_s2 + $0x30] sm:$0xff]  ;;  %v52_v42 = vld [vmem:[%s2268_s2 + $0x28] sm:$0xff] }
 0x312   :  { %v1637_v49 = vunpack.i.h.bf16 %v1635_v46  ;;  %v1636_v50 = vunpack.i.l.bf16 %v1635_v46  ;;  %638 = vmatprep.mubr.f32.mxu0 %v507_v47  ;;  %708 = vmatprep.mubr.f32.mxu1 %v509_v48  ;;  %v1541_v45 = vpack.c.bf16 %v22_v44, %v21_v25  ;;  %v23_v46 = vld [vmem:[%s2268_s2 + $0x60] sm:$0xff]  ;;  %v24_v47 = vld [vmem:[%s2268_s2 + $0x78] sm:$0xff]  ;;  %v51_v41 = vld [vmem:[%s2268_s2 + $0x10] sm:$0xff] }
 0x313   :  { %v1544_v48 = vpack.c.bf16 %v24_v47, %v23_v46  ;;  %v53_v25 = vld [vmem:[%s2268_s2 + $0x40] sm:$0xff]  ;;  %v54_v44 = vld [vmem:[%s2268_s2 + $0x58] sm:$0xff]  ;;  %v55_v46 = vld [vmem:[%s2268_s2 + $0x70] sm:$0xff] }
 0x314   :  { %v469_v54 = vsel %vm468_vm1, %v1955_v56, %v1636_v50  ;;  %v471_v55 = vsel %vm468_vm1, %v456_v7, %v1637_v49  ;;  %v39_v56 = vld [vmem:[%s2268_s2 + $0x68] sm:$0xff]  ;;  %v1529_v7 = vpack.c.bf16 %v46_v6, %v45_v5  ;;  %v25_v49 = vld [vmem:[%s2268_s2 + $0x90] sm:$0xff]  ;;  %v807_v6 = vlaneseq }
 0x315   :  { %v506_v22 = vsel %vm505_vm2, %v469_v54, %v497_v52  ;;  %v508_v57 = vsel %vm505_vm2, %v471_v55, %v499_v51  ;;  %v1520_v60 = vpack.c.bf16 %v40_v59, %v39_v56  ;;  %v26_v50 = vld [vmem:[%s2268_s2 + $0xa8] sm:$0xff]  ;;  %v27_v52 = vld [vmem:[%s2268_s2 + $0xc0] sm:$0xff]  ;;  %v29_v55 = vld [vmem:[%s2268_s2 + $0xf0] sm:$0xff] }
 0x316   :  { %639 = vmatmul.mubr.f32.vlgmr.msra.gmra.mrb[4].mxu0 %v506_v22  ;;  %709 = vmatmul.mubr.f32.vlgmr.msra.gmra.mrb[4].mxu1 %v508_v57  ;;  %v1547_v51 = vpack.c.bf16 %v26_v50, %v25_v49  ;;  %v1553_v18 = vpack.c.bf16 %v30_v63, %v29_v55  ;;  %v31_v22 = vld [vmem:[%s2268_s2 + $0x120] sm:$0xff]  ;;  %v32_v57 = vld [vmem:[%s2268_s2 + $0x138] sm:$0xff]  ;;  %v33_v56 = vld [vmem:[%s2268_s2 + $0x150] sm:$0xff] }
 0x317   :  { %1515 = vmatpush3.bf16.msra.mxu0 %v2022_v53  ;;  %1309 = vmatprep.mubr.msk.f32.mxu0 %vm1652_vm3, %v1646_v3  ;;  %v34_v59 = vld [vmem:[%s2268_s2 + $0x168] sm:$0xff]  ;;  %v57_v49 = vld [vmem:[%s2268_s2 + $0xa0] sm:$0xff]  ;;  %v58_v50 = vld [vmem:[%s2268_s2 + $0xb8] sm:$0xff] }
 0x318   :  { %1516 = vmatprep.subr.bf16.mxu0 %v1651_v21  ;;  %1344 = vmatprep.mubr.msk.f32.mxu1 %vm1652_vm3, %v1646_v3  ;;  %v56_v47 = vld [vmem:[%s2268_s2 + $0x88] sm:$0xff]  ;;  %v61_v55 = vld [vmem:[%s2268_s2 + $0x100] sm:$0xff]  ;;  %v62_v63 = vld [vmem:[%s2268_s2 + $0x118] sm:$0xff] }
 0x319   :  { %1539 = vmatpush3.bf16.msra.mxu1 %v1538_v43  ;;  %v1586_v43 = vpack.c.bf16 %v52_v42, %v51_v41 }
 0x31a   :  { %1540 = vmatprep.subr.bf16.mxu1 %v1651_v21 }
 0x31b   :  { %1518 = vmatpush3.bf16.msra.mxu0 %v2038_v58 }
 0x31c   :  { %1519 = vmatprep.subr.bf16.mxu0 %v1651_v21 }
 0x31d   :  { %1542 = vmatpush3.bf16.msra.mxu1 %v1541_v45  ;;  %v1589_v45 = vpack.c.bf16 %v54_v44, %v53_v25 }
 0x31e   :  { %1543 = vmatprep.subr.bf16.mxu1 %v1651_v21 }
 0x31f   :  { %1521 = vmatpush3.bf16.msra.mxu0 %v1520_v60 }
 0x320   :  { %1522 = vmatprep.subr.bf16.mxu0 %v1651_v21 }
 0x321   :  { %1545 = vmatpush3.bf16.msra.mxu1 %v1544_v48  ;;  %v1592_v48 = vpack.c.bf16 %v56_v47, %v55_v46 }
 0x322   :  { %1546 = vmatprep.subr.bf16.mxu1 %v1651_v21 }
 0x323   :  { %1524 = vmatpush3.bf16.msra.mxu0 %v1523_v0 }
 0x324   :  { %1525 = vmatprep.subr.bf16.mxu0 %v1651_v21 }
 0x325   :  { %1548 = vmatpush3.bf16.msra.mxu1 %v1547_v51  ;;  %v1595_v51 = vpack.c.bf16 %v58_v50, %v57_v49 }
 0x326   :  { %1549 = vmatprep.subr.bf16.mxu1 %v1651_v21 }
 0x327   :  { %1527 = vmatpush3.bf16.msra.mxu0 %v1526_v4 }
 0x328   :  { %1528 = vmatprep.subr.bf16.mxu0 %v1651_v21 }
 0x32b   :  { %1530 = vmatpush3.bf16.msra.mxu0 %v1529_v7 }
 0x32c   :  { %1531 = vmatprep.subr.bf16.mxu0 %v1651_v21 }
 0x32f   :  { %1533 = vmatpush3.bf16.msra.mxu0 %v1532_v10 }
 0x330   :  { %1534 = vmatprep.subr.bf16.mxu0 %v1651_v21 }
 0x333   :  { %1536 = vmatpush3.bf16.msra.mxu0 %v1535_v13 }
 0x334   :  { %1561 = vmatprep.subr.bf16.mxu0 %v1651_v21 }
 0x3e9   :  { %v1171_v14 = vpop.f32.mrb[4].mxu0  ;;  %v1206_v15 = vpop.f32.mrb[4].mxu1 }
 0x3ea   :  { %v1172_v16 = vpop.f32.mrb[5].mxu0  ;;  %v1207_v17 = vpop.f32.mrb[5].mxu1 }
 0x3eb   :  { %v1173_v19 = vadd.f32 %v1172_v16, %v1171_v14  ;;  %v1208_v20 = vadd.f32 %v1207_v17, %v1206_v15 }
 0x3ed   :  { %v2089_v23 = vadd.f32 %v1208_v20, %v1173_v19 }
 0x3ef   :  { %v715_v24 = vsel %vm714_vm4, %v2089_v23, 0.0  ;;  %v722_v26 = vmul.f32 %v2089_v23, %v2089_v23 }
 0x3f0   :  { %v716_v27 = vrot.slane %v715_v24, 4 }
 0x3f1   :  { %v723_v28 = vsel %vm714_vm4, %v722_v26, 0.0 }
 0x3f2   :  { %v717_v29 = vadd.f32 %v716_v27, %v715_v24  ;;  %v724_v30 = vrot.slane %v723_v28, 4 }
 0x3f4   :  { %v718_v31 = vrot.slane %v717_v29, 2  ;;  %v725_v32 = vadd.f32 %v724_v30, %v723_v28 }
 0x3f6   :  { %v719_v33 = vadd.f32 %v718_v31, %v717_v29  ;;  %v726_v34 = vrot.slane %v725_v32, 2 }
 0x3f8   :  { %v720_v35 = vrot.slane %v719_v33, 1  ;;  %v727_v36 = vadd.f32 %v726_v34, %v725_v32 }
 0x3fa   :  { %v728_v37 = vrot.slane %v727_v36, 1  ;;  %v721_v38 = vadd.f32 %v720_v35, %v719_v33 }
 0x3fc   :  { %v729_v39 = vadd.f32 %v728_v37, %v727_v36 }
 0x3fe   :  { %v730_v40 = vsel %vm505_vm2, %v721_v38, %v729_v39 }
 0x3ff   :  { %1310 = vmatmul.mubr.f32.vlgmr.msra.gmra.mrb[6].mxu0 %v730_v40 }
 0x400   :  { %1563 = vmatpush3.bf16.msra.mxu0 %v2022_v53  ;;  %1379 = vmatprep.mubr.msk.f32.mxu0 %vm1652_vm3, %v1646_v3  ;;  %v28_v53 = vld [vmem:[%s2268_s2 + $0xd8] sm:$0xff] }
 0x401   :  { %1564 = vmatprep.subr.bf16.mxu0 %v1651_v21  ;;  %v1550_v54 = vpack.c.bf16 %v28_v53, %v27_v52  ;;  %v59_v52 = vld [vmem:[%s2268_s2 + $0xd0] sm:$0xff]  ;;  %v60_v53 = vld [vmem:[%s2268_s2 + $0xe8] sm:$0xff] }
 0x403   :  { %1551 = vmatpush3.bf16.msra.mxu1 %v1550_v54  ;;  %v1598_v54 = vpack.c.bf16 %v60_v53, %v59_v52 }
 0x404   :  { %1566 = vmatpush3.bf16.msra.mxu0 %v2038_v58  ;;  %1552 = vmatprep.subr.bf16.mxu1 %v1651_v21  ;;  %v1556_v58 = vpack.c.bf16 %v32_v57, %v31_v22  ;;  %v63_v22 = vld [vmem:[%s2268_s2 + $0x130] sm:$0xff]  ;;  %v64_v57 = vld [vmem:[%s2268_s2 + $0x148] sm:$0xff] }
 0x405   :  { %1567 = vmatprep.subr.bf16.mxu0 %v1651_v21 }
 0x407   :  { %1554 = vmatpush3.bf16.msra.mxu1 %v1553_v18  ;;  %v1601_v18 = vpack.c.bf16 %v62_v63, %v61_v55 }
 0x408   :  { %1569 = vmatpush3.bf16.msra.mxu0 %v1520_v60  ;;  %1555 = vmatprep.subr.bf16.mxu1 %v1651_v21  ;;  %v1559_v60 = vpack.c.bf16 %v34_v59, %v33_v56  ;;  %v65_v56 = vld [vmem:[%s2268_s2 + $0x160] sm:$0xff]  ;;  %v66_v59 = vld [vmem:[%s2268_s2 + $0x178] sm:$0xff] }
 0x409   :  { %1570 = vmatprep.subr.bf16.mxu0 %v1651_v21 }
 0x40b   :  { %1557 = vmatpush3.bf16.msra.mxu1 %v1556_v58  ;;  %v1604_v58 = vpack.c.bf16 %v64_v57, %v63_v22 }
 0x40c   :  { %1572 = vmatpush3.bf16.msra.mxu0 %v1523_v0  ;;  %1558 = vmatprep.subr.bf16.mxu1 %v1651_v21 }
 0x40d   :  { %1573 = vmatprep.subr.bf16.mxu0 %v1651_v21 }
 0x40f   :  { %1560 = vmatpush3.bf16.msra.mxu1 %v1559_v60  ;;  %v1607_v60 = vpack.c.bf16 %v66_v59, %v65_v56 }
 0x410   :  { %1575 = vmatpush3.bf16.msra.mxu0 %v1526_v4  ;;  %1585 = vmatprep.subr.bf16.mxu1 %v1651_v21 }
 0x411   :  { %1576 = vmatprep.subr.bf16.mxu0 %v1651_v21 }
 0x414   :  { %1578 = vmatpush3.bf16.msra.mxu0 %v1529_v7  ;;  %v2164_v7 = vshrl.u32 %v807_v6, 7 }
 0x415   :  { %1579 = vmatprep.subr.bf16.mxu0 %v1651_v21 }
 0x416   :  { %v2167_v8 = vsub.s32 0, %v2164_v7  ;;  %v1112_v25 = vsub.s32 5, %v2164_v7  ;;  %v1118_v49 = vsub.s32 6, %v2164_v7  ;;  %v1126_v63 = vsub.s32 7, %v2164_v7 }
 0x418   :  { %1581 = vmatpush3.bf16.msra.mxu0 %v1532_v10  ;;  %v2172_v10 = vld [vmem:[%s2266_s3] sm:$0xff] }
 0x419   :  { %1582 = vmatprep.subr.bf16.mxu0 %v1651_v21  ;;  %v1119_v52 = vrot.slane %v2172_v10, %v1118_v49 }
 0x41c   :  { %1584 = vmatpush3.bf16.msra.mxu0 %v1535_v13  ;;  %v825_v13 = vsub.s32 1, %v2164_v7 }
 0x41e   :  { %v826_v17 = vrot.slane %v2172_v10, %v825_v13  ;;  %v1008_v13 = vsub.s32 3, %v2164_v7 }
 0x4d2   :  { %v797_v61 = vpop.f32.mrb[6].mxu0 }
 0x4d3   :  { %v801_v62 = vmul.f32 0.0625, %v797_v61  ;;  %v1311_v0 = vpop.f32.mrb[7].mxu0 }
 0x4d5   :  { %v802_v1 = vmul.f32 %v801_v62, %v801_v62  ;;  %v810_v11 = vrot.slane %v801_v62, %v2167_v8 }
 0x4d7   :  { %v804_v2 = vrot.slane %v802_v1, 7  ;;  %v811_v15 = vsub.f32 %v2089_v23, %v810_v11 }
 0x4d9   :  { %v806_v4 = vsub.f32 %v801_v62, %v804_v2 }
 0x4db   :  { %v812_v5 = vadd.f32 1e-05, %v806_v4 }
 0x4dd   :  { %1640 = vrsqrt.f32 %v812_v5 }
 0x4e7   :  { %v1641_v9 = vpop.eup %1640 }
 0x4e8   :  { %v815_v12 = vrot.slane %v1641_v9, 1 }
 0x4ea   :  { %v817_v14 = vmul.f32 %v815_v12, %v2172_v10  ;;  %v1003_v12 = vsub.s32 2, %v2164_v7 }
 0x4ec   :  { %v821_v16 = vrot.slane %v817_v14, %v2167_v8 }
 0x4ee   :  { %v822_v19 = vmul.f32 %v821_v16, %v811_v15  ;;  %v1009_v16 = vrot.slane %v2172_v10, %v1008_v13 }
 0x4f0   :  { %v827_v20 = vadd.f32 %v826_v17, %v822_v19 }
 0x4f2   :  { %1345 = vmatmul.mubr.f32.vlgmr.msra.gmra.mrb[6].mxu1 %v827_v20 }
 0x4f3   :  { %1414 = vmatprep.mubr.msk.f32.mxu1 %vm1652_vm3, %v1646_v3  ;;  %1587 = vmatpush3.bf16.msra.mxu1 %v1586_v43  ;;  %v1107_v43 = vsub.s32 4, %v2164_v7 }
 0x4f4   :  { %1588 = vmatprep.subr.bf16.mxu1 %v1651_v21 }
 0x4f7   :  { %1590 = vmatpush3.bf16.msra.mxu1 %v1589_v45 }
 0x4f8   :  { %1591 = vmatprep.subr.bf16.mxu1 %v1651_v21 }
 0x4fb   :  { %1593 = vmatpush3.bf16.msra.mxu1 %v1592_v48  ;;  %v1113_v48 = vrot.slane %v2172_v10, %v1112_v25 }
 0x4fc   :  { %1594 = vmatprep.subr.bf16.mxu1 %v1651_v21 }
 0x4ff   :  { %1596 = vmatpush3.bf16.msra.mxu1 %v1595_v51 }
 0x500   :  { %1597 = vmatprep.subr.bf16.mxu1 %v1651_v21 }
 0x503   :  { %1599 = vmatpush3.bf16.msra.mxu1 %v1598_v54 }
 0x504   :  { %1600 = vmatprep.subr.bf16.mxu1 %v1651_v21 }
 0x507   :  { %1602 = vmatpush3.bf16.msra.mxu1 %v1601_v18  ;;  %v1127_v18 = vrot.slane %v2172_v10, %v1126_v63 }
 0x508   :  { %1603 = vmatprep.subr.bf16.mxu1 %v1651_v21 }
 0x50b   :  { %1605 = vmatpush3.bf16.msra.mxu1 %v1604_v58 }
 0x50c   :  { %1606 = vmatprep.subr.bf16.mxu1 %v1651_v21 }
 0x50f   :  { %1608 = vmatpush3.bf16.msra.mxu1 %v1607_v60 }
 0x5c5   :  { %v2182_v24 = vpop.f32.mrb[6].mxu1 }
 0x5c6   :  { %v898_v26 = vsel %vm714_vm4, %v2182_v24, 0.0  ;;  %v905_v27 = vmul.f32 %v2182_v24, %v2182_v24  ;;  %v1346_v28 = vpop.f32.mrb[7].mxu1 }
 0x5c7   :  { %v899_v23 = vrot.slane %v898_v26, 4 }
 0x5c8   :  { %v906_v29 = vsel %vm714_vm4, %v905_v27, 0.0 }
 0x5c9   :  { %v900_v30 = vadd.f32 %v899_v23, %v898_v26  ;;  %v907_v31 = vrot.slane %v906_v29, 4 }
 0x5cb   :  { %v901_v32 = vrot.slane %v900_v30, 2  ;;  %v908_v33 = vadd.f32 %v907_v31, %v906_v29 }
 0x5cd   :  { %v902_v34 = vadd.f32 %v901_v32, %v900_v30  ;;  %v909_v35 = vrot.slane %v908_v33, 2 }
 0x5cf   :  { %v903_v36 = vrot.slane %v902_v34, 1  ;;  %v910_v3 = vadd.f32 %v909_v35, %v908_v33 }
 0x5d1   :  { %v911_v37 = vrot.slane %v910_v3, 1  ;;  %v904_v38 = vadd.f32 %v903_v36, %v902_v34 }
 0x5d3   :  { %v912_v39 = vadd.f32 %v911_v37, %v910_v3 }
 0x5d5   :  { %v913_v40 = vsel %vm505_vm2, %v904_v38, %v912_v39 }
 0x5d6   :  { %1380 = vmatmul.mubr.f32.vlgmr.msra.gmra.mrb[8].mxu0 %v913_v40 }
 0x6a9   :  { %v980_v61 = vpop.f32.mrb[8].mxu0 }
 0x6aa   :  { %v984_v62 = vmul.f32 0.0625, %v980_v61  ;;  %v1381_v0 = vpop.f32.mrb[9].mxu0 }
 0x6ac   :  { %v985_v1 = vmul.f32 %v984_v62, %v984_v62  ;;  %v993_v2 = vrot.slane %v984_v62, %v2167_v8 }
 0x6ae   :  { %v987_v4 = vrot.slane %v985_v1, 7  ;;  %v994_v5 = vsub.f32 %v2182_v24, %v993_v2 }
 0x6b0   :  { %v989_v21 = vsub.f32 %v984_v62, %v987_v4 }
 0x6b2   :  { %v995_v6 = vadd.f32 1e-05, %v989_v21 }
 0x6b4   :  { %1642 = vrsqrt.f32 %v995_v6 }
 0x6be   :  { %v1643_v9 = vpop.eup %1642 }
 0x6bf   :  { %v998_v11 = vrot.slane %v1643_v9, 7 }
 0x6c1   :  { %v1000_v14 = vmul.f32 %v998_v11, %v2172_v10 }
 0x6c3   :  { %v1004_v15 = vrot.slane %v1000_v14, %v1003_v12 }
 0x6c5   :  { %v1005_v17 = vmul.f32 %v1004_v15, %v994_v5 }
 0x6c7   :  { %v1010_v19 = vadd.f32 %v1009_v16, %v1005_v17 }
 0x6c9   :  { %1415 = vmatmul.mubr.f32.vlgmr.msra.gmra.mrb[8].mxu1 %v1010_v19 }
 0x79c   :  { %v1077_v8 = vpop.f32.mrb[8].mxu1 }
 0x79d   :  { %v1090_v20 = vmul.f32 %v1077_v8, %v1077_v8  ;;  %v1416_v24 = vpop.f32.mrb[9].mxu1  ;;  %v1082_v26 = vsel %vm1081_vm5, %v1077_v8, 0.0 }
 0x79e   :  { %v1083_v27 = vrot.slane %v1082_v26, 4 }
 0x79f   :  { %v1091_v28 = vsel %vm1081_vm5, %v1090_v20, 0.0 }
 0x7a0   :  { %v1084_v23 = vadd.f32 %v1083_v27, %v1082_v26  ;;  %v1092_v29 = vrot.slane %v1091_v28, 4 }
 0x7a2   :  { %v1085_v30 = vrot.slane %v1084_v23, 2  ;;  %v1093_v31 = vadd.f32 %v1092_v29, %v1091_v28 }
 0x7a4   :  { %v1086_v32 = vadd.f32 %v1085_v30, %v1084_v23  ;;  %v1094_v33 = vrot.slane %v1093_v31, 2 }
 0x7a6   :  { %v1087_v34 = vrot.slane %v1086_v32, 1  ;;  %v1095_v35 = vadd.f32 %v1094_v33, %v1093_v31 }
 0x7a8   :  { %v1088_v36 = vadd.f32 %v1087_v34, %v1086_v32  ;;  %v1096_v3 = vrot.slane %v1095_v35, 1 }
 0x7aa   :  { %v1089_v37 = vmul.f32 0.5, %v1088_v36  ;;  %v1097_v38 = vadd.f32 %v1096_v3, %v1095_v35 }
 0x7ac   :  { %v1098_v39 = vmul.f32 0.5, %v1097_v38  ;;  %v1099_v40 = vmul.f32 %v1089_v37, %v1089_v37  ;;  %v1101_v46 = vsub.f32 %v1077_v8, %v1089_v37 }
 0x7ae   :  { %v1100_v41 = vsub.f32 %v1098_v39, %v1099_v40 }
 0x7b0   :  { %v1102_v42 = vadd.f32 1e-05, %v1100_v41 }
 0x7b2   :  { %1644 = vrsqrt.f32 %v1102_v42 }
 0x7bc   :  { %v1645_v44 = vpop.eup %1644 }
 0x7bd   :  { %v1104_v45 = vmul.f32 %v1645_v44, %v2172_v10 }
 0x7bf   :  { %v1108_v47 = vrot.slane %v1104_v45, %v1107_v43 }
 0x7c1   :  { %v1109_v50 = vmul.f32 %v1108_v47, %v1101_v46 }
 0x7c3   :  { %v1114_v51 = vadd.f32 %v1113_v48, %v1109_v50 }
 0x7c5   :  { %v1115_v53 = vmax.f32 %v1114_v51, 0.0 }
 0x7c7   :  { %v1120_v54 = vmul.f32 %v1119_v52, %v1115_v53 }
 0x7c9   :  { %v1121_v55 = vsel %vm1081_vm5, %v1120_v54, 0.0 }
 0x7ca   :  { %1122 = vadd.xlane.f32.xlu1 %v1121_v55 }
 0x857   :  { %v1123_v22 = vpop.xlane.xlu1 %1122 }
 0x858   :  { %v1128_v57 = vadd.f32 %v1127_v18, %v1123_v22 }
 0x85a   :  { %1130 = vst.msk [vmem:[%s2269_s4] sm:$0x3] %vm1129_vm6, %v1128_v57 }

</bundles_post_ra>
